<compile_context>
chip_gen: v5e
topology: v5e:2x2
jax: 0.10.0
libtpu: 0.0.40
codegen_flags: <defaults>
</compile_context>

<pallas_src>
import functools
from typing import NamedTuple, Tuple

import jax
import jax.numpy as jnp
from jax.experimental import pallas as pl
from jax.experimental.pallas import tpu as pltpu


def _round_up(x: int, m: int) -> int:
    return (x + m - 1) // m * m


def _cdiv(a: int, b: int) -> int:
    return -(-a // b)


# --------------------------------------------------------------------------------------
# Kernels
# --------------------------------------------------------------------------------------
def _fused_mlp_kernel(x_ref, *refs, n_layers: int):
    """Whole MLP in one kernel body.

    refs = (w0, b0, w1, b1, ..., w_{L-1}, b_{L-1}, o_ref).
    Chained MXU matmuls (bf16 operands, f32 accumulation); bias + ReLU in f32 on the VPU.
    Intermediates live on-chip (carried as bf16 between layers); only the final lane-dense
    output tile is stored.
    """
    o_ref = refs[-1]
    h = x_ref[...]                                   # bf16 [tile_B, Din]
    for li in range(n_layers):
        w = refs[2 * li][...]                        # bf16 [Din(_p), Dout_p]
        b = refs[2 * li + 1][...]                    # f32  [1, Dout_p]
        y = jnp.dot(h, w, preferred_element_type=jnp.float32) + b
        if li != n_layers - 1:
            # ReLU (dropout = identity in eval mode); carry activation in bf16.
            h = jnp.maximum(y, 0.0).astype(jnp.bfloat16)
        else:
            h = y
    o_ref[...] = h.astype(o_ref.dtype)


def _layer_kernel(x_ref, w_ref, b_ref, o_ref, *, relu: bool):
    """Single Linear (+ optional ReLU) — used by the weight-streaming fallback path."""
    y = jnp.dot(x_ref[...], w_ref[...], preferred_element_type=jnp.float32) + b_ref[...]
    if relu:
        y = jnp.maximum(y, 0.0)
    o_ref[...] = y.astype(o_ref.dtype)


# --------------------------------------------------------------------------------------
# Parameter preparation (pad + cast once, reuse across forward calls)
# --------------------------------------------------------------------------------------
class PackedParams(NamedTuple):
    layers: Tuple    # ((w_p bf16 [Din(_p), Dout_p], b_p f32 [1, Dout_p]), ...)
    in_dim: int
    out_dim: int
    dims_p: Tuple    # (in_dim (unpadded), hid_p, ..., out_p)  — feature dim at every boundary


def prepare_forecasting_params(params):
    """params: list of (w [Din, Dout] f32, b [Dout] f32), one per nn.Linear."""
    in_dim = params[0][0].shape[0]
    out_dim = params[-1][0].shape[1]
    dims = [in_dim] + [w.shape[1] for (w, _) in params]
    # Input feature axis left unpadded (DMA-lean); every matmul OUTPUT axis padded to 128.
    dims_p = [in_dim] + [_round_up(d, 128) for d in dims[1:]]
    layers = []
    for li, (w, b) in enumerate(params):
        din, dout = w.shape
        din_p, dout_p = dims_p[li], dims_p[li + 1]
        w_p = jnp.zeros((din_p, dout_p), jnp.bfloat16).at[:din, :dout].set(
            w.astype(jnp.bfloat16))
        b_p = jnp.zeros((1, dout_p), jnp.float32).at[:, :dout].set(
            b.reshape(1, -1).astype(jnp.float32))
        layers.append((w_p, b_p))
    return PackedParams(tuple(layers), in_dim, out_dim, tuple(dims_p))


# --------------------------------------------------------------------------------------
# Sizing helpers
# --------------------------------------------------------------------------------------
def _vmem_capacity_bytes() -> int:
    try:
        info = pltpu.get_tpu_info()
        cap = getattr(info, "vmem_capacity_bytes", None)
        if cap:
            return int(cap)
    except Exception:
        pass
    return 64 * 1024 * 1024  # conservative default (v7x per-TensorCore)


def _pick_batch_tile(B: int, batch_tile: int) -> int:
    align = 16                                # bf16 sublane packing: 16 rows per vreg
    n_steps = max(1, _cdiv(B, batch_tile))
    if B >= 2 * align:
        n_steps = max(n_steps, 2)             # give both v7x TensorCores >=1 grid step
    return _round_up(_cdiv(B, n_steps), align)


def _fused_vmem_bytes(tile: int, packed: PackedParams, weight_bufs: int) -> int:
    w_bytes = sum(w.size * w.dtype.itemsize + b.size * b.dtype.itemsize
                  for (w, b) in packed.layers) * weight_bufs
    d0, d_last, d_max = packed.dims_p[0], packed.dims_p[-1], max(packed.dims_p)
    act = 2 * tile * d0 * 2          # double-buffered bf16 input tile
    act += 2 * tile * d_last * 4     # double-buffered f32 output tile
    act += 2 * tile * d_max * 4      # live intermediates (estimate)
    return w_bytes + act


# --------------------------------------------------------------------------------------
# Forward
# --------------------------------------------------------------------------------------
def _layer_forward(h, w_p, b_p, *, relu, out_dtype, tile, vmem_budget):
    """Fallback path: one Linear as its own pallas_call, weight N-axis tiled over a grid axis."""
    Bp, din = h.shape
    dout_p = w_p.shape[1]
    tn = dout_p
    for cand in (512, 256, 128):
        if dout_p >= cand and dout_p % cand == 0:
            tn = cand
            break
    grid = (Bp // tile, dout_p // tn)
    # TODO(synk): add K-axis tiling for extremely large hidden dims in this fallback path.
    return pl.pallas_call(
        functools.partial(_layer_kernel, relu=relu),
        out_shape=jax.ShapeDtypeStruct((Bp, dout_p), out_dtype),
        grid=grid,
        in_specs=[pl.BlockSpec((tile, din), lambda i, j: (i, 0)),
                  pl.BlockSpec((din, tn), lambda i, j: (0, j)),
                  pl.BlockSpec((1, tn), lambda i, j: (0, j))],
        out_specs=pl.BlockSpec((tile, tn), lambda i, j: (i, j)),
        compiler_params=pltpu.CompilerParams(
            dimension_semantics=("parallel", "parallel"),
            vmem_limit_bytes=int(min(vmem_budget, 64 * 1024 * 1024))),
    )(h, w_p, b_p)


def forecasting_model_forward(x, packed: PackedParams, *, batch_tile: int = 512):
    """x: [B, in_dim] f32; packed: output of prepare_forecasting_params.

    Returns [B, out_dim] f32, matching Forecasting_Model.forward in eval mode
    (bf16 matmul operands, f32 accumulation).
    """
    B, in_dim = x.shape
    assert in_dim == packed.in_dim, (in_dim, packed.in_dim)
    n_layers = len(packed.layers)

    vmem_budget = int(0.85 * _vmem_capacity_bytes())

    # Batch tile: multiple of 16, minimal row padding, >=2 grid steps when possible,
    # shrunk if needed to fit the all-weights-resident fused kernel in VMEM.
    tile = _pick_batch_tile(B, batch_tile)
    while tile > 16 and _fused_vmem_bytes(tile, packed, weight_bufs=1) > vmem_budget:
        tile = max(16, _round_up(tile // 2, 16))
    Bp = _round_up(B, tile)
    grid = (Bp // tile,)

    # bf16 activation stream; padded rows are zero (sliced off at the end).
    x_p = jnp.zeros((Bp, in_dim), jnp.bfloat16).at[:B, :].set(x.astype(jnp.bfloat16))

    use_fused = _fused_vmem_bytes(tile, packed, weight_bufs=1) <= vmem_budget

    if use_fused:
        flops = 2 * Bp * sum(w.shape[0] * w.shape[1] for (w, _) in packed.layers)
        bytes_accessed = (x_p.size * 2 + Bp * packed.dims_p[-1] * 4 +
                          sum(w.size * 2 + b.size * 4 for (w, b) in packed.layers))
        cost = pl.CostEstimate(flops=flops, transcendentals=0,
                               bytes_accessed=bytes_accessed)

        def run(single_buffer_weights: bool):
            vmem_limit = min(
                vmem_budget,
                max(32 * 1024 * 1024,
                    _fused_vmem_bytes(tile, packed,
                                      1 if single_buffer_weights else 2)
                    + 4 * 1024 * 1024))
            in_specs = [pl.BlockSpec((tile, in_dim), lambda i: (i, 0))]
            flat_inputs = [x_p]
            for (w_p, b_p) in packed.layers:
                din_p, dout_p = w_p.shape
                extra = ({"pipeline_mode": pl.Buffered(1)}
                         if single_buffer_weights else {})
                # Constant index_maps -> weights/biases stay VMEM-resident across grid steps.
                in_specs.append(pl.BlockSpec((din_p, dout_p), lambda i: (0, 0), **extra))
                in_specs.append(pl.BlockSpec((1, dout_p), lambda i: (0, 0), **extra))
                flat_inputs.extend([w_p, b_p])
            return pl.pallas_call(
                functools.partial(_fused_mlp_kernel, n_layers=n_layers),
                out_shape=jax.ShapeDtypeStruct((Bp, packed.dims_p[-1]), jnp.float32),
                grid=grid,
                in_specs=in_specs,
                out_specs=pl.BlockSpec((tile, packed.dims_p[-1]), lambda i: (i, 0)),
                compiler_params=pltpu.CompilerParams(
                    dimension_semantics=("parallel",),
                    vmem_limit_bytes=int(vmem_limit)),
                cost_estimate=cost,
            )(*flat_inputs)

        try:
            out_p = run(single_buffer_weights=True)
        except Exception:
            # Older JAX / lowering that rejects Buffered(1): default (double-buffered) specs.
            out_p = run(single_buffer_weights=False)
    else:
        # Weights don't fit VMEM (e.g. very large hidden dims on v7x): stream per layer.
        h = x_p
        for li, (w_p, b_p) in enumerate(packed.layers):
            last = (li == n_layers - 1)
            h = _layer_forward(h, w_p, b_p, relu=not last,
                               out_dtype=jnp.float32 if last else jnp.bfloat16,
                               tile=tile, vmem_budget=vmem_budget)
        out_p = h

    # Slice away padded batch rows and padded output lanes.
    return out_p[:B, :packed.out_dim]


# --------------------------------------------------------------------------------------
# Init mirroring nn.Linear default (U(-1/sqrt(fan_in), 1/sqrt(fan_in)))
# --------------------------------------------------------------------------------------
def init_forecasting_params(key, in_dim, hid_dim, out_dim, n_layers):
    dims = [in_dim] + [hid_dim] * n_layers + [out_dim]
    params = []
    for li in range(len(dims) - 1):
        fan_in, fan_out = dims[li], dims[li + 1]
        key, kw, kb = jax.random.split(key, 3)
        bound = 1.0 / jnp.sqrt(jnp.float32(fan_in))
        w = jax.random.uniform(kw, (fan_in, fan_out), jnp.float32, -bound, bound)
        b = jax.random.uniform(kb, (fan_out,), jnp.float32, -bound, bound)
        params.append((w, b))
    return params


if __name__ == "__main__":
    # Small, MLP-consistent shapes.
    batch = 4
    in_dim, hid_dim, out_dim, n_layers = 16, 32, 8, 3
    dropout = 0.1  # eval-mode forward -> dropout is identity

    key = jax.random.PRNGKey(0)
    key, kx = jax.random.split(key)
    x = jax.random.normal(kx, (batch, in_dim), dtype=jnp.float32)

    params = init_forecasting_params(key, in_dim, hid_dim, out_dim, n_layers)
    packed = prepare_forecasting_params(params)   # pad + cast once, reuse across calls

    out = forecasting_model_forward(x, packed)
    out = jax.block_until_ready(out)

    # Reference: identical bf16-operand / f32-accumulate math in plain JAX.
    h = x.astype(jnp.bfloat16)
    for i, (w, b) in enumerate(params):
        y = jnp.dot(h, w.astype(jnp.bfloat16),
                    preferred_element_type=jnp.float32) + b.reshape(1, -1)
        if i != len(params) - 1:
            h = jnp.maximum(y, 0.0).astype(jnp.bfloat16)
        else:
            h = y
    ref = h

    assert out.shape == (batch, out_dim), out.shape
    assert jnp.allclose(out, ref, atol=2e-3, rtol=2e-3), (
        float(jnp.max(jnp.abs(out - ref))))

    print("KERNEL_OK")
</pallas_src>

<mosaic_0001>
module attributes {stable_mosaic.version = 11 : i64} {
  func.func @_fused_mlp_kernel(%arg0: i32, %arg1: memref<16x16xbf16, #tpu.memory_space<vmem>>, %arg2: memref<16x128xbf16, #tpu.memory_space<vmem>>, %arg3: memref<1x128xf32, #tpu.memory_space<vmem>>, %arg4: memref<128x128xbf16, #tpu.memory_space<vmem>>, %arg5: memref<1x128xf32, #tpu.memory_space<vmem>>, %arg6: memref<128x128xbf16, #tpu.memory_space<vmem>>, %arg7: memref<1x128xf32, #tpu.memory_space<vmem>>, %arg8: memref<128x128xbf16, #tpu.memory_space<vmem>>, %arg9: memref<1x128xf32, #tpu.memory_space<vmem>>, %arg10: memref<16x128xf32, #tpu.memory_space<vmem>>) attributes {dimension_semantics = [#tpu.dimension_semantics<parallel>], iteration_bounds = array<i64: 1>, scalar_prefetch = 0 : i64, scratch_operands = 0 : i64, tpu.core_type = #tpu.core_type<tc>, window_params = [{transform_indices = @transform_0, window_bounds = array<i64: 16, 16>}, {pipeline_mode = #tpu.pipeline_mode<synchronous>, transform_indices = @transform_1, window_bounds = array<i64: 16, 128>}, {pipeline_mode = #tpu.pipeline_mode<synchronous>, transform_indices = @transform_2, window_bounds = array<i64: 1, 128>}, {pipeline_mode = #tpu.pipeline_mode<synchronous>, transform_indices = @transform_3, window_bounds = array<i64: 128, 128>}, {pipeline_mode = #tpu.pipeline_mode<synchronous>, transform_indices = @transform_4, window_bounds = array<i64: 1, 128>}, {pipeline_mode = #tpu.pipeline_mode<synchronous>, transform_indices = @transform_5, window_bounds = array<i64: 128, 128>}, {pipeline_mode = #tpu.pipeline_mode<synchronous>, transform_indices = @transform_6, window_bounds = array<i64: 1, 128>}, {pipeline_mode = #tpu.pipeline_mode<synchronous>, transform_indices = @transform_7, window_bounds = array<i64: 128, 128>}, {pipeline_mode = #tpu.pipeline_mode<synchronous>, transform_indices = @transform_8, window_bounds = array<i64: 1, 128>}, {transform_indices = @transform_9, window_bounds = array<i64: 16, 128>}]} {
    %c0 = arith.constant 0 : index
    %c0_0 = arith.constant 0 : index
    %0 = vector.load %arg1[%c0, %c0_0] : memref<16x16xbf16, #tpu.memory_space<vmem>>, vector<16x16xbf16>
    %c0_1 = arith.constant 0 : index
    %c0_2 = arith.constant 0 : index
    %1 = vector.load %arg2[%c0_1, %c0_2] : memref<16x128xbf16, #tpu.memory_space<vmem>>, vector<16x128xbf16>
    %c0_3 = arith.constant 0 : index
    %c0_4 = arith.constant 0 : index
    %2 = vector.load %arg3[%c0_3, %c0_4] : memref<1x128xf32, #tpu.memory_space<vmem>>, vector<1x128xf32>
    %cst = arith.constant dense<0.000000e+00> : vector<16x128xf32>
    %3 = tpu.matmul %0, %1, %cst {dimension_numbers = #tpu.dot_dimension_numbers<[1], [0], [0], [1], [0, 0, 1, 1], [], []>} : vector<16x16xbf16>, vector<16x128xbf16>, vector<16x128xf32> -> vector<16x128xf32>
    %4 = vector.broadcast %2 : vector<1x128xf32> to vector<16x128xf32>
    %5 = arith.addf %3, %4 : vector<16x128xf32>
    %cst_5 = arith.constant 0.000000e+00 : f32
    %6 = vector.broadcast %cst_5 : f32 to vector<16x128xf32>
    %7 = arith.maximumf %5, %6 : vector<16x128xf32>
    %8 = arith.truncf %7 : vector<16x128xf32> to vector<16x128xbf16>
    %c0_6 = arith.constant 0 : index
    %c0_7 = arith.constant 0 : index
    %9 = vector.load %arg4[%c0_6, %c0_7] : memref<128x128xbf16, #tpu.memory_space<vmem>>, vector<128x128xbf16>
    %c0_8 = arith.constant 0 : index
    %c0_9 = arith.constant 0 : index
    %10 = vector.load %arg5[%c0_8, %c0_9] : memref<1x128xf32, #tpu.memory_space<vmem>>, vector<1x128xf32>
    %cst_10 = arith.constant dense<0.000000e+00> : vector<16x128xf32>
    %11 = tpu.matmul %8, %9, %cst_10 {dimension_numbers = #tpu.dot_dimension_numbers<[1], [0], [0], [1], [0, 0, 1, 1], [], []>} : vector<16x128xbf16>, vector<128x128xbf16>, vector<16x128xf32> -> vector<16x128xf32>
    %12 = vector.broadcast %10 : vector<1x128xf32> to vector<16x128xf32>
    %13 = arith.addf %11, %12 : vector<16x128xf32>
    %cst_11 = arith.constant 0.000000e+00 : f32
    %14 = vector.broadcast %cst_11 : f32 to vector<16x128xf32>
    %15 = arith.maximumf %13, %14 : vector<16x128xf32>
    %16 = arith.truncf %15 : vector<16x128xf32> to vector<16x128xbf16>
    %c0_12 = arith.constant 0 : index
    %c0_13 = arith.constant 0 : index
    %17 = vector.load %arg6[%c0_12, %c0_13] : memref<128x128xbf16, #tpu.memory_space<vmem>>, vector<128x128xbf16>
    %c0_14 = arith.constant 0 : index
    %c0_15 = arith.constant 0 : index
    %18 = vector.load %arg7[%c0_14, %c0_15] : memref<1x128xf32, #tpu.memory_space<vmem>>, vector<1x128xf32>
    %cst_16 = arith.constant dense<0.000000e+00> : vector<16x128xf32>
    %19 = tpu.matmul %16, %17, %cst_16 {dimension_numbers = #tpu.dot_dimension_numbers<[1], [0], [0], [1], [0, 0, 1, 1], [], []>} : vector<16x128xbf16>, vector<128x128xbf16>, vector<16x128xf32> -> vector<16x128xf32>
    %20 = vector.broadcast %18 : vector<1x128xf32> to vector<16x128xf32>
    %21 = arith.addf %19, %20 : vector<16x128xf32>
    %cst_17 = arith.constant 0.000000e+00 : f32
    %22 = vector.broadcast %cst_17 : f32 to vector<16x128xf32>
    %23 = arith.maximumf %21, %22 : vector<16x128xf32>
    %24 = arith.truncf %23 : vector<16x128xf32> to vector<16x128xbf16>
    %c0_18 = arith.constant 0 : index
    %c0_19 = arith.constant 0 : index
    %25 = vector.load %arg8[%c0_18, %c0_19] : memref<128x128xbf16, #tpu.memory_space<vmem>>, vector<128x128xbf16>
    %c0_20 = arith.constant 0 : index
    %c0_21 = arith.constant 0 : index
    %26 = vector.load %arg9[%c0_20, %c0_21] : memref<1x128xf32, #tpu.memory_space<vmem>>, vector<1x128xf32>
    %cst_22 = arith.constant dense<0.000000e+00> : vector<16x128xf32>
    %27 = tpu.matmul %24, %25, %cst_22 {dimension_numbers = #tpu.dot_dimension_numbers<[1], [0], [0], [1], [0, 0, 1, 1], [], []>} : vector<16x128xbf16>, vector<128x128xbf16>, vector<16x128xf32> -> vector<16x128xf32>
    %28 = vector.broadcast %26 : vector<1x128xf32> to vector<16x128xf32>
    %29 = arith.addf %27, %28 : vector<16x128xf32>
    %c0_23 = arith.constant 0 : index
    %c0_24 = arith.constant 0 : index
    %30 = vector.load %arg10[%c0_23, %c0_24] : memref<16x128xf32, #tpu.memory_space<vmem>>, vector<16x128xf32>
    tpu.vector_store %arg10[%c0_23, %c0_24], %29 {strides = array<i32>} : memref<16x128xf32, #tpu.memory_space<vmem>>, vector<16x128xf32>,
    return
  }
  func.func @transform_0(%arg0: i32) -> (i32, i32) {
    %c0_i32 = arith.constant 0 : i32
    %c0_i32_0 = arith.constant 0 : i32
    return %arg0, %c0_i32 : i32, i32
  }
  func.func @transform_1(%arg0: i32) -> (i32, i32) {
    %c0_i32 = arith.constant 0 : i32
    %c0_i32_0 = arith.constant 0 : i32
    %c0_i32_1 = arith.constant 0 : i32
    return %c0_i32, %c0_i32_0 : i32, i32
  }
  func.func @transform_2(%arg0: i32) -> (i32, i32) {
    %c0_i32 = arith.constant 0 : i32
    %c0_i32_0 = arith.constant 0 : i32
    %c0_i32_1 = arith.constant 0 : i32
    return %c0_i32, %c0_i32_0 : i32, i32
  }
  func.func @transform_3(%arg0: i32) -> (i32, i32) {
    %c0_i32 = arith.constant 0 : i32
    %c0_i32_0 = arith.constant 0 : i32
    %c0_i32_1 = arith.constant 0 : i32
    return %c0_i32, %c0_i32_0 : i32, i32
  }
  func.func @transform_4(%arg0: i32) -> (i32, i32) {
    %c0_i32 = arith.constant 0 : i32
    %c0_i32_0 = arith.constant 0 : i32
    %c0_i32_1 = arith.constant 0 : i32
    return %c0_i32, %c0_i32_0 : i32, i32
  }
  func.func @transform_5(%arg0: i32) -> (i32, i32) {
    %c0_i32 = arith.constant 0 : i32
    %c0_i32_0 = arith.constant 0 : i32
    %c0_i32_1 = arith.constant 0 : i32
    return %c0_i32, %c0_i32_0 : i32, i32
  }
  func.func @transform_6(%arg0: i32) -> (i32, i32) {
    %c0_i32 = arith.constant 0 : i32
    %c0_i32_0 = arith.constant 0 : i32
    %c0_i32_1 = arith.constant 0 : i32
    return %c0_i32, %c0_i32_0 : i32, i32
  }
  func.func @transform_7(%arg0: i32) -> (i32, i32) {
    %c0_i32 = arith.constant 0 : i32
    %c0_i32_0 = arith.constant 0 : i32
    %c0_i32_1 = arith.constant 0 : i32
    return %c0_i32, %c0_i32_0 : i32, i32
  }
  func.func @transform_8(%arg0: i32) -> (i32, i32) {
    %c0_i32 = arith.constant 0 : i32
    %c0_i32_0 = arith.constant 0 : i32
    %c0_i32_1 = arith.constant 0 : i32
    return %c0_i32, %c0_i32_0 : i32, i32
  }
  func.func @transform_9(%arg0: i32) -> (i32, i32) {
    %c0_i32 = arith.constant 0 : i32
    %c0_i32_0 = arith.constant 0 : i32
    return %arg0, %c0_i32 : i32, i32
  }
}

module attributes {stable_mosaic.version = 11 : i64} {
  func.func @_fused_mlp_kernel(%arg0: i32, %arg1: memref<16x16xbf16, #tpu.memory_space<vmem>>, %arg2: memref<16x128xbf16, #tpu.memory_space<vmem>>, %arg3: memref<1x128xf32, #tpu.memory_space<vmem>>, %arg4: memref<128x128xbf16, #tpu.memory_space<vmem>>, %arg5: memref<1x128xf32, #tpu.memory_space<vmem>>, %arg6: memref<128x128xbf16, #tpu.memory_space<vmem>>, %arg7: memref<1x128xf32, #tpu.memory_space<vmem>>, %arg8: memref<128x128xbf16, #tpu.memory_space<vmem>>, %arg9: memref<1x128xf32, #tpu.memory_space<vmem>>, %arg10: memref<16x128xf32, #tpu.memory_space<vmem>>) attributes {dimension_semantics = [#tpu.dimension_semantics<parallel>], iteration_bounds = array<i64: 1>, scalar_prefetch = 0 : i64, scratch_operands = 0 : i64, tpu.core_type = #tpu.core_type<tc>, window_params = [{transform_indices = @transform_0, window_bounds = array<i64: 16, 16>}, {pipeline_mode = #tpu.pipeline_mode<synchronous>, transform_indices = @transform_1, window_bounds = array<i64: 16, 128>}, {pipeline_mode = #tpu.pipeline_mode<synchronous>, transform_indices = @transform_2, window_bounds = array<i64: 1, 128>}, {pipeline_mode = #tpu.pipeline_mode<synchronous>, transform_indices = @transform_3, window_bounds = array<i64: 128, 128>}, {pipeline_mode = #tpu.pipeline_mode<synchronous>, transform_indices = @transform_4, window_bounds = array<i64: 1, 128>}, {pipeline_mode = #tpu.pipeline_mode<synchronous>, transform_indices = @transform_5, window_bounds = array<i64: 128, 128>}, {pipeline_mode = #tpu.pipeline_mode<synchronous>, transform_indices = @transform_6, window_bounds = array<i64: 1, 128>}, {pipeline_mode = #tpu.pipeline_mode<synchronous>, transform_indices = @transform_7, window_bounds = array<i64: 128, 128>}, {pipeline_mode = #tpu.pipeline_mode<synchronous>, transform_indices = @transform_8, window_bounds = array<i64: 1, 128>}, {transform_indices = @transform_9, window_bounds = array<i64: 16, 128>}]} {
    %c0 = arith.constant 0 : index
    %c0_0 = arith.constant 0 : index
    %0 = vector.load %arg1[%c0, %c0_0] : memref<16x16xbf16, #tpu.memory_space<vmem>>, vector<16x16xbf16>
    %c0_1 = arith.constant 0 : index
    %c0_2 = arith.constant 0 : index
    %1 = vector.load %arg2[%c0_1, %c0_2] : memref<16x128xbf16, #tpu.memory_space<vmem>>, vector<16x128xbf16>
    %c0_3 = arith.constant 0 : index
    %c0_4 = arith.constant 0 : index
    %2 = vector.load %arg3[%c0_3, %c0_4] : memref<1x128xf32, #tpu.memory_space<vmem>>, vector<1x128xf32>
    %cst = arith.constant dense<0.000000e+00> : vector<16x128xf32>
    %3 = tpu.matmul %0, %1, %cst {dimension_numbers = #tpu.dot_dimension_numbers<[1], [0], [0], [1], [0, 0, 1, 1], [], []>} : vector<16x16xbf16>, vector<16x128xbf16>, vector<16x128xf32> -> vector<16x128xf32>
    %4 = vector.broadcast %2 : vector<1x128xf32> to vector<16x128xf32>
    %5 = arith.addf %3, %4 : vector<16x128xf32>
    %cst_5 = arith.constant 0.000000e+00 : f32
    %6 = vector.broadcast %cst_5 : f32 to vector<16x128xf32>
    %7 = arith.maximumf %5, %6 : vector<16x128xf32>
    %8 = arith.truncf %7 : vector<16x128xf32> to vector<16x128xbf16>
    %c0_6 = arith.constant 0 : index
    %c0_7 = arith.constant 0 : index
    %9 = vector.load %arg4[%c0_6, %c0_7] : memref<128x128xbf16, #tpu.memory_space<vmem>>, vector<128x128xbf16>
    %c0_8 = arith.constant 0 : index
    %c0_9 = arith.constant 0 : index
    %10 = vector.load %arg5[%c0_8, %c0_9] : memref<1x128xf32, #tpu.memory_space<vmem>>, vector<1x128xf32>
    %cst_10 = arith.constant dense<0.000000e+00> : vector<16x128xf32>
    %11 = tpu.matmul %8, %9, %cst_10 {dimension_numbers = #tpu.dot_dimension_numbers<[1], [0], [0], [1], [0, 0, 1, 1], [], []>} : vector<16x128xbf16>, vector<128x128xbf16>, vector<16x128xf32> -> vector<16x128xf32>
    %12 = vector.broadcast %10 : vector<1x128xf32> to vector<16x128xf32>
    %13 = arith.addf %11, %12 : vector<16x128xf32>
    %cst_11 = arith.constant 0.000000e+00 : f32
    %14 = vector.broadcast %cst_11 : f32 to vector<16x128xf32>
    %15 = arith.maximumf %13, %14 : vector<16x128xf32>
    %16 = arith.truncf %15 : vector<16x128xf32> to vector<16x128xbf16>
    %c0_12 = arith.constant 0 : index
    %c0_13 = arith.constant 0 : index
    %17 = vector.load %arg6[%c0_12, %c0_13] : memref<128x128xbf16, #tpu.memory_space<vmem>>, vector<128x128xbf16>
    %c0_14 = arith.constant 0 : index
    %c0_15 = arith.constant 0 : index
    %18 = vector.load %arg7[%c0_14, %c0_15] : memref<1x128xf32, #tpu.memory_space<vmem>>, vector<1x128xf32>
    %cst_16 = arith.constant dense<0.000000e+00> : vector<16x128xf32>
    %19 = tpu.matmul %16, %17, %cst_16 {dimension_numbers = #tpu.dot_dimension_numbers<[1], [0], [0], [1], [0, 0, 1, 1], [], []>} : vector<16x128xbf16>, vector<128x128xbf16>, vector<16x128xf32> -> vector<16x128xf32>
    %20 = vector.broadcast %18 : vector<1x128xf32> to vector<16x128xf32>
    %21 = arith.addf %19, %20 : vector<16x128xf32>
    %cst_17 = arith.constant 0.000000e+00 : f32
    %22 = vector.broadcast %cst_17 : f32 to vector<16x128xf32>
    %23 = arith.maximumf %21, %22 : vector<16x128xf32>
    %24 = arith.truncf %23 : vector<16x128xf32> to vector<16x128xbf16>
    %c0_18 = arith.constant 0 : index
    %c0_19 = arith.constant 0 : index
    %25 = vector.load %arg8[%c0_18, %c0_19] : memref<128x128xbf16, #tpu.memory_space<vmem>>, vector<128x128xbf16>
    %c0_20 = arith.constant 0 : index
    %c0_21 = arith.constant 0 : index
    %26 = vector.load %arg9[%c0_20, %c0_21] : memref<1x128xf32, #tpu.memory_space<vmem>>, vector<1x128xf32>
    %cst_22 = arith.constant dense<0.000000e+00> : vector<16x128xf32>
    %27 = tpu.matmul %24, %25, %cst_22 {dimension_numbers = #tpu.dot_dimension_numbers<[1], [0], [0], [1], [0, 0, 1, 1], [], []>} : vector<16x128xbf16>, vector<128x128xbf16>, vector<16x128xf32> -> vector<16x128xf32>
    %28 = vector.broadcast %26 : vector<1x128xf32> to vector<16x128xf32>
    %29 = arith.addf %27, %28 : vector<16x128xf32>
    %c0_23 = arith.constant 0 : index
    %c0_24 = arith.constant 0 : index
    %30 = vector.load %arg10[%c0_23, %c0_24] : memref<16x128xf32, #tpu.memory_space<vmem>>, vector<16x128xf32>
    tpu.vector_store %arg10[%c0_23, %c0_24], %29 {strides = array<i32>} : memref<16x128xf32, #tpu.memory_space<vmem>>, vector<16x128xf32>,
    return
  }
  func.func @transform_0(%arg0: i32) -> (i32, i32) {
    %c0_i32 = arith.constant 0 : i32
    %c0_i32_0 = arith.constant 0 : i32
    return %arg0, %c0_i32 : i32, i32
  }
  func.func @transform_1(%arg0: i32) -> (i32, i32) {
    %c0_i32 = arith.constant 0 : i32
    %c0_i32_0 = arith.constant 0 : i32
    %c0_i32_1 = arith.constant 0 : i32
    return %c0_i32, %c0_i32_0 : i32, i32
  }
  func.func @transform_2(%arg0: i32) -> (i32, i32) {
    %c0_i32 = arith.constant 0 : i32
    %c0_i32_0 = arith.constant 0 : i32
    %c0_i32_1 = arith.constant 0 : i32
    return %c0_i32, %c0_i32_0 : i32, i32
  }
  func.func @transform_3(%arg0: i32) -> (i32, i32) {
    %c0_i32 = arith.constant 0 : i32
    %c0_i32_0 = arith.constant 0 : i32
    %c0_i32_1 = arith.constant 0 : i32
    return %c0_i32, %c0_i32_0 : i32, i32
  }
  func.func @transform_4(%arg0: i32) -> (i32, i32) {
    %c0_i32 = arith.constant 0 : i32
    %c0_i32_0 = arith.constant 0 : i32
    %c0_i32_1 = arith.constant 0 : i32
    return %c0_i32, %c0_i32_0 : i32, i32
  }
  func.func @transform_5(%arg0: i32) -> (i32, i32) {
    %c0_i32 = arith.constant 0 : i32
    %c0_i32_0 = arith.constant 0 : i32
    %c0_i32_1 = arith.constant 0 : i32
    return %c0_i32, %c0_i32_0 : i32, i32
  }
  func.func @transform_6(%arg0: i32) -> (i32, i32) {
    %c0_i32 = arith.constant 0 : i32
    %c0_i32_0 = arith.constant 0 : i32
    %c0_i32_1 = arith.constant 0 : i32
    return %c0_i32, %c0_i32_0 : i32, i32
  }
  func.func @transform_7(%arg0: i32) -> (i32, i32) {
    %c0_i32 = arith.constant 0 : i32
    %c0_i32_0 = arith.constant 0 : i32
    %c0_i32_1 = arith.constant 0 : i32
    return %c0_i32, %c0_i32_0 : i32, i32
  }
  func.func @transform_8(%arg0: i32) -> (i32, i32) {
    %c0_i32 = arith.constant 0 : i32
    %c0_i32_0 = arith.constant 0 : i32
    %c0_i32_1 = arith.constant 0 : i32
    return %c0_i32, %c0_i32_0 : i32, i32
  }
  func.func @transform_9(%arg0: i32) -> (i32, i32) {
    %c0_i32 = arith.constant 0 : i32
    %c0_i32_0 = arith.constant 0 : i32
    return %arg0, %c0_i32 : i32, i32
  }
}

</mosaic_0001>

<bundles_post_ra>
// kernel: tpu_custom_call.1
= control target key start
LH: loop header
LB: loop body
LE: loop exit
PB: predicated region body
PF: predicated region fallthrough
CT: control target
= control target key end

     0   :  { %14 = vsyncpa [#allocation3], 0  ;;  %s814_s0 = inlined_call_operand.hbm [shape: bf16[16,16], index: 0, kind: input, shape index: {}]   ;;  %s815_s1 = inlined_call_operand.hbm [shape: bf16[16,128], index: 1, kind: input, shape index: {}]   ;;  %s816_s2 = inlined_call_operand.vmem [shape: f32[1,128], index: 2, kind: input, shape index: {}]   ;;  %s817_s3 = inlined_call_operand.hbm [shape: bf16[128,128], index: 3, kind: input, shape index: {}]   ;;  %s818_s4 = inlined_call_operand.vmem [shape: f32[1,128], index: 4, kind: input, shape index: {}]   ;;  %s819_s5 = inlined_call_operand.hbm [shape: bf16[128,128], index: 5, kind: input, shape index: {}]   ;;  %s820_s6 = inlined_call_operand.vmem [shape: f32[1,128], index: 6, kind: input, shape index: {}]   ;;  %s821_s7 = inlined_call_operand.hbm [shape: bf16[128,128], index: 7, kind: input, shape index: {}]   ;;  %s822_s8 = inlined_call_operand.vmem [shape: f32[1,128], index: 8, kind: input, shape index: {}]   ;;  %s823_s9 = inlined_call_operand.hbm [shape: f32[16,128], index: 9, kind: output, shape index: {}]  }
   0x1   :  { %15 = vsyncpa [#allocation6], 0 }
   0x2   :  { %16 = vsyncpa [#allocation9], 0 }
   0x3   :  { %17 = vsyncpa [#allocation4], 0  ;;  %s35_s11 = sshll.u32 %s815_s1, 4  ;;  %s724_s12 = smov [#allocation5]   ;;  %s36_s11 = int_to_ptr.hbm [resolvable:$true] %s35_s11 }
   0x4   :  { %s37_s13 = sshll.u32 %s724_s12, 4  ;;  %s65_s16 = sshll.u32 %s819_s5, 4  ;;  %s38_s13 = int_to_ptr.vmem [resolvable:$true] %s37_s13  ;;  %s66_s16 = int_to_ptr.hbm [resolvable:$true] %s65_s16 }
   0x5   :  { %s725_s17 = smov 64   ;;  %s726_s18 = smov 4  }
   0x6   :  { %43 = dma.hbm_to_vmem [thread:$0]  %s36_s11, 128, %s38_s13, [#allocation6], %s725_s17, %s725_s17, %s726_s18  }
   0x7   :  { %s727_s19 = smov [#allocation8]   ;;  %s22_s23 = sshll.u32 %s814_s0, 4  ;;  %s23_s23 = int_to_ptr.hbm [resolvable:$true] %s22_s23 }
   0x8   :  { %s67_s20 = sshll.u32 %s727_s19, 4  ;;  %s50_s25 = sshll.u32 %s817_s3, 4  ;;  %s68_s20 = int_to_ptr.vmem [resolvable:$true] %s67_s20  ;;  %s51_s25 = int_to_ptr.hbm [resolvable:$true] %s50_s25 }
   0x9   :  { %73 = dma.hbm_to_vmem [thread:$0]  %s66_s16, 1024, %s68_s20, [#allocation9], %s725_s17, %s725_s17, %s726_s18  }
   0xa   :  { %s728_s26 = smov [#allocation2]   ;;  %s729_s5 = smov [#allocation7]  }
   0xb   :  { %s24_s27 = sshll.u32 %s728_s26, 4  ;;  %s52_s28 = sshll.u32 %s729_s5, 4  ;;  %s25_s27 = int_to_ptr.vmem [resolvable:$true] %s24_s27  ;;  %s53_s28 = int_to_ptr.vmem [resolvable:$true] %s52_s28 }
   0xc   :  { %30 = dma.hbm_to_vmem [thread:$0]  %s23_s23, 128, %s25_s27, [#allocation3], %s725_s17, %s725_s17, %s726_s18  }
   0xd   :  { %s80_s10 = sshll.u32 %s821_s7, 4  ;;  %s730_s0 = smov [#allocation10]   ;;  %s81_s10 = int_to_ptr.hbm [resolvable:$true] %s80_s10 }
   0xe   :  { %58 = dma.hbm_to_vmem [thread:$0]  %s51_s25, 1024, %s53_s28, [#allocation6], %s725_s17, %s725_s17, %s726_s18  }
   0xf   :  { %s82_s11 = sshll.u32 %s730_s0, 4  ;;  %s83_s11 = int_to_ptr.vmem [resolvable:$true] %s82_s11 }
  0x10   :  { %88 = dma.hbm_to_vmem [thread:$0]  %s81_s10, 1024, %s83_s11, [#allocation9], %s725_s17, %s725_s17, %s726_s18  }
  0x11   :  { %716 = dma.done.wait [#allocation3], 128  }
  0x12   :  { %717 = vsyncadd [#allocation3], 4294967168 }
  0x13   :  { %718 = dma.done.wait [#allocation6], 1152  }
  0x14   :  { %719 = vsyncadd [#allocation6], 4294966144 }
  0x15   :  { %720 = dma.done.wait [#allocation9], 2048  }
  0x16   :  { %721 = vsyncadd [#allocation9], 4294965248  ;;  %v533_v0 = vld [vmem:[#allocation5] sm:$0xff]  ;;  %v532_v2 = vld [vmem:[#allocation2] sm:$0xff]  ;;  %vm131_vm0 = vcmask 130048   ;;  %s731_s16 = smov [#allocation11]  }
  0x17   :  { %v541_v1 = vld [vmem:[#allocation7 + $0x38] sm:$0xff]  ;;  %142 = vmatpush.bf16.msra.mxu0 %v533_v0  ;;  %v540_v3 = vld [vmem:[#allocation7 + $0x30] sm:$0xff]  ;;  %v539_v4 = vld [vmem:[#allocation7 + $0x28] sm:$0xff]  ;;  %s410_s17 = sshll.u32 %s731_s16, 4  ;;  %s732_s20 = smov 128   ;;  %s411_s17 = int_to_ptr.vmem [resolvable:$true] %s410_s17 }
  0x18   :  { %220 = vmatpush.bf16.msra.mxu1 %v541_v1  ;;  %v538_v5 = vld [vmem:[#allocation7 + $0x20] sm:$0xff]  ;;  %v537_v6 = vld [vmem:[#allocation7 + $0x18] sm:$0xff]  ;;  %v536_v7 = vld [vmem:[#allocation7 + $0x10] sm:$0xff]  ;;  %s733_s21 = smov 8  }
  0x19   :  { %v535_v8 = vld [vmem:[#allocation7 + $0x8] sm:$0xff]  ;;  %v534_v9 = vld [vmem:[#allocation7] sm:$0xff]  ;;  %v549_v10 = vld [vmem:[#allocation8 + $0x38] sm:$0xff] }
  0x1a   :  { %435 = vmatmul.msk.bf16.vlgmr.msra.gmra.mxu0 %vm131_vm0, %v532_v2  ;;  %305 = vmatpush.bf16.msra.mxu2 %v549_v10  ;;  %v548_v11 = vld [vmem:[#allocation8 + $0x30] sm:$0xff]  ;;  %v547_v12 = vld [vmem:[#allocation8 + $0x28] sm:$0xff]  ;;  %v546_v13 = vld [vmem:[#allocation8 + $0x20] sm:$0xff] }
  0x1b   :  { %v568_v15 = vld [vmem:[%s816_s2] ss:$0 sm:$0xff]  ;;  %v545_v22 = vld [vmem:[#allocation8 + $0x18] sm:$0xff]  ;;  %v543_v24 = vld [vmem:[#allocation8 + $0x8] sm:$0xff] }
  0x1c   :  { %221 = vmatpush.bf16.msra.mxu1 %v540_v3  ;;  %v544_v23 = vld [vmem:[#allocation8 + $0x10] sm:$0xff]  ;;  %v542_v25 = vld [vmem:[#allocation8] sm:$0xff]  ;;  %v557_v26 = vld [vmem:[#allocation10 + $0x38] sm:$0xff] }
  0x1d   :  { %390 = vmatpush.bf16.msra.mxu3 %v557_v26  ;;  %v556_v27 = vld [vmem:[#allocation10 + $0x30] sm:$0xff]  ;;  %v555_v28 = vld [vmem:[#allocation10 + $0x28] sm:$0xff]  ;;  %v554_v29 = vld [vmem:[#allocation10 + $0x20] sm:$0xff] }
  0x1e   :  { %306 = vmatpush.bf16.msra.mxu2 %v548_v11  ;;  %v569_v31 = vld [vmem:[%s818_s4] ss:$0 sm:$0xff]  ;;  %v553_v38 = vld [vmem:[#allocation10 + $0x18] sm:$0xff]  ;;  %v551_v40 = vld [vmem:[#allocation10 + $0x8] sm:$0xff] }
  0x1f   :  { %v552_v39 = vld [vmem:[#allocation10 + $0x10] sm:$0xff]  ;;  %v550_v41 = vld [vmem:[#allocation10] sm:$0xff] }
  0x20   :  { %222 = vmatpush.bf16.msra.mxu1 %v539_v4  ;;  %v570_v43 = vld [vmem:[%s820_s6] ss:$0 sm:$0xff]  ;;  %s412_s6 = sshll.u32 %s823_s9, 4  ;;  %s413_s6 = int_to_ptr.hbm [resolvable:$true] %s412_s6 }
  0x21   :  { %391 = vmatpush.bf16.msra.mxu3 %v556_v27  ;;  %v571_v50 = vld [vmem:[%s822_s8] ss:$0 sm:$0xff] }
  0x22   :  { %307 = vmatpush.bf16.msra.mxu2 %v547_v12 }
  0x24   :  { %223 = vmatpush.bf16.msra.mxu1 %v538_v5 }
  0x25   :  { %392 = vmatpush.bf16.msra.mxu3 %v555_v28 }
  0x26   :  { %308 = vmatpush.bf16.msra.mxu2 %v546_v13 }
  0x28   :  { %224 = vmatpush.bf16.msra.mxu1 %v537_v6 }
  0x29   :  { %393 = vmatpush.bf16.msra.mxu3 %v554_v29 }
  0x2a   :  { %309 = vmatpush.bf16.msra.mxu2 %v545_v22 }
  0x2c   :  { %225 = vmatpush.bf16.msra.mxu1 %v536_v7 }
  0x2d   :  { %394 = vmatpush.bf16.msra.mxu3 %v553_v38 }
  0x2e   :  { %310 = vmatpush.bf16.msra.mxu2 %v544_v23 }
  0x30   :  { %226 = vmatpush.bf16.msra.mxu1 %v535_v8 }
  0x31   :  { %395 = vmatpush.bf16.msra.mxu3 %v552_v39 }
  0x32   :  { %311 = vmatpush.bf16.msra.mxu2 %v543_v24 }
  0x34   :  { %227 = vmatpush.bf16.msra.mxu1 %v534_v9 }
  0x35   :  { %396 = vmatpush.bf16.msra.mxu3 %v551_v40 }
  0x36   :  { %312 = vmatpush.bf16.msra.mxu2 %v542_v25 }
  0x39   :  { %397 = vmatpush.bf16.msra.mxu3 %v550_v41 }
  0x97   :  { %v144_v14 = vpop.f32.mrf.mxu0 }
  0x98   :  { %v145_v16 = vadd.f32 %v568_v15, %v144_v14 }
  0x9a   :  { %v149_v19 = vmax.f32 %v145_v16, 0.0 }
  0x9f   :  { %v146_v17 = vpop.f32.mrf.mxu0 }
  0xa0   :  { %v147_v18 = vadd.f32 %v568_v15, %v146_v17 }
  0xa2   :  { %v150_v20 = vmax.f32 %v147_v18, 0.0 }
  0xa4   :  { %v151_v21 = vpack.c.bf16 %v150_v20, %v149_v19 }
  0xa6   :  { %228 = vmatmul.bf16.vlgmr.msra.gmra.mxu1 %v151_v21 }
 0x123   :  { %v229_v30 = vpop.f32.mrf.mxu1 }
 0x124   :  { %v230_v32 = vadd.f32 %v569_v31, %v229_v30 }
 0x126   :  { %v234_v35 = vmax.f32 %v230_v32, 0.0 }
 0x12b   :  { %v231_v33 = vpop.f32.mrf.mxu1 }
 0x12c   :  { %v232_v34 = vadd.f32 %v569_v31, %v231_v33 }
 0x12e   :  { %v235_v36 = vmax.f32 %v232_v34, 0.0 }
 0x130   :  { %v236_v37 = vpack.c.bf16 %v235_v36, %v234_v35 }
 0x132   :  { %313 = vmatmul.bf16.vlgmr.msra.gmra.mxu2 %v236_v37 }
 0x1b5   :  { %v314_v42 = vpop.f32.mrf.mxu2 }
 0x1b6   :  { %v315_v44 = vadd.f32 %v570_v43, %v314_v42 }
 0x1b8   :  { %v319_v47 = vmax.f32 %v315_v44, 0.0 }
 0x1bd   :  { %v316_v45 = vpop.f32.mrf.mxu2 }
 0x1be   :  { %v317_v46 = vadd.f32 %v570_v43, %v316_v45 }
 0x1c0   :  { %v320_v48 = vmax.f32 %v317_v46, 0.0 }
 0x1c2   :  { %v321_v49 = vpack.c.bf16 %v320_v48, %v319_v47 }
 0x1c4   :  { %398 = vmatmul.bf16.vlgmr.msra.gmra.mxu3 %v321_v49 }
 0x247   :  { %v399_v51 = vpop.f32.mrf.mxu3 }
 0x248   :  { %v400_v52 = vadd.f32 %v571_v50, %v399_v51 }
 0x24a   :  { %404 = vst [vmem:[#allocation11] sm:$0xff] %v400_v52 }
 0x24f   :  { %v401_v53 = vpop.f32.mrf.mxu3 }
 0x250   :  { %v402_v54 = vadd.f32 %v571_v50, %v401_v53 }
 0x252   :  { %405 = vst [vmem:[#allocation11 + $0x8] sm:$0xff] %v402_v54 }
 0x253   :  { %418 = dma.vmem_to_hbm [thread:$0]  %s411_s17, 256, %s413_s6, [#allocation4], %s732_s20, %s732_s20, %s733_s21  }
 0x254   :  { %722 = dma.done.wait [#allocation4], 256  }
 0x255   :  { %723 = vsyncadd [#allocation4], 4294967040 }
 0x256   :  { %423 = vsyncpa [#allocation3], 1 }
 0x257   :  { %424 = vsyncpa [#allocation6], 1 }
 0x258   :  { %425 = vsyncpa [#allocation9], 1 }
 0x259   :  { %426 = vsyncpa [#allocation4], 1 }

// kernel: tpu_custom_call.1
= control target key start
LH: loop header
LB: loop body
LE: loop exit
PB: predicated region body
PF: predicated region fallthrough
CT: control target
= control target key end

     0   :  { %14 = vsyncpa [#allocation3], 0  ;;  %s814_s0 = inlined_call_operand.hbm [shape: bf16[16,16], index: 0, kind: input, shape index: {}]   ;;  %s815_s1 = inlined_call_operand.hbm [shape: bf16[16,128], index: 1, kind: input, shape index: {}]   ;;  %s816_s2 = inlined_call_operand.vmem [shape: f32[1,128], index: 2, kind: input, shape index: {}]   ;;  %s817_s3 = inlined_call_operand.hbm [shape: bf16[128,128], index: 3, kind: input, shape index: {}]   ;;  %s818_s4 = inlined_call_operand.vmem [shape: f32[1,128], index: 4, kind: input, shape index: {}]   ;;  %s819_s5 = inlined_call_operand.hbm [shape: bf16[128,128], index: 5, kind: input, shape index: {}]   ;;  %s820_s6 = inlined_call_operand.vmem [shape: f32[1,128], index: 6, kind: input, shape index: {}]   ;;  %s821_s7 = inlined_call_operand.hbm [shape: bf16[128,128], index: 7, kind: input, shape index: {}]   ;;  %s822_s8 = inlined_call_operand.vmem [shape: f32[1,128], index: 8, kind: input, shape index: {}]   ;;  %s823_s9 = inlined_call_operand.hbm [shape: f32[16,128], index: 9, kind: output, shape index: {}]  }
   0x1   :  { %15 = vsyncpa [#allocation6], 0 }
   0x2   :  { %16 = vsyncpa [#allocation9], 0 }
   0x3   :  { %17 = vsyncpa [#allocation4], 0  ;;  %s35_s11 = sshll.u32 %s815_s1, 4  ;;  %s724_s12 = smov [#allocation5]   ;;  %s36_s11 = int_to_ptr.hbm [resolvable:$true] %s35_s11 }
   0x4   :  { %s37_s13 = sshll.u32 %s724_s12, 4  ;;  %s65_s16 = sshll.u32 %s819_s5, 4  ;;  %s38_s13 = int_to_ptr.vmem [resolvable:$true] %s37_s13  ;;  %s66_s16 = int_to_ptr.hbm [resolvable:$true] %s65_s16 }
   0x5   :  { %s725_s17 = smov 64   ;;  %s726_s18 = smov 4  }
   0x6   :  { %43 = dma.hbm_to_vmem [thread:$0]  %s36_s11, 128, %s38_s13, [#allocation6], %s725_s17, %s725_s17, %s726_s18  }
   0x7   :  { %s727_s19 = smov [#allocation8]   ;;  %s22_s23 = sshll.u32 %s814_s0, 4  ;;  %s23_s23 = int_to_ptr.hbm [resolvable:$true] %s22_s23 }
   0x8   :  { %s67_s20 = sshll.u32 %s727_s19, 4  ;;  %s50_s25 = sshll.u32 %s817_s3, 4  ;;  %s68_s20 = int_to_ptr.vmem [resolvable:$true] %s67_s20  ;;  %s51_s25 = int_to_ptr.hbm [resolvable:$true] %s50_s25 }
   0x9   :  { %73 = dma.hbm_to_vmem [thread:$0]  %s66_s16, 1024, %s68_s20, [#allocation9], %s725_s17, %s725_s17, %s726_s18  }
   0xa   :  { %s728_s26 = smov [#allocation2]   ;;  %s729_s5 = smov [#allocation7]  }
   0xb   :  { %s24_s27 = sshll.u32 %s728_s26, 4  ;;  %s52_s28 = sshll.u32 %s729_s5, 4  ;;  %s25_s27 = int_to_ptr.vmem [resolvable:$true] %s24_s27  ;;  %s53_s28 = int_to_ptr.vmem [resolvable:$true] %s52_s28 }
   0xc   :  { %30 = dma.hbm_to_vmem [thread:$0]  %s23_s23, 128, %s25_s27, [#allocation3], %s725_s17, %s725_s17, %s726_s18  }
   0xd   :  { %s80_s10 = sshll.u32 %s821_s7, 4  ;;  %s730_s0 = smov [#allocation10]   ;;  %s81_s10 = int_to_ptr.hbm [resolvable:$true] %s80_s10 }
   0xe   :  { %58 = dma.hbm_to_vmem [thread:$0]  %s51_s25, 1024, %s53_s28, [#allocation6], %s725_s17, %s725_s17, %s726_s18  }
   0xf   :  { %s82_s11 = sshll.u32 %s730_s0, 4  ;;  %s83_s11 = int_to_ptr.vmem [resolvable:$true] %s82_s11 }
  0x10   :  { %88 = dma.hbm_to_vmem [thread:$0]  %s81_s10, 1024, %s83_s11, [#allocation9], %s725_s17, %s725_s17, %s726_s18  }
  0x11   :  { %716 = dma.done.wait [#allocation3], 128  }
  0x12   :  { %717 = vsyncadd [#allocation3], 4294967168 }
  0x13   :  { %718 = dma.done.wait [#allocation6], 1152  }
  0x14   :  { %719 = vsyncadd [#allocation6], 4294966144 }
  0x15   :  { %720 = dma.done.wait [#allocation9], 2048  }
  0x16   :  { %721 = vsyncadd [#allocation9], 4294965248  ;;  %v533_v0 = vld [vmem:[#allocation5] sm:$0xff]  ;;  %v532_v2 = vld [vmem:[#allocation2] sm:$0xff]  ;;  %vm131_vm0 = vcmask 130048   ;;  %s731_s16 = smov [#allocation11]  }
  0x17   :  { %v541_v1 = vld [vmem:[#allocation7 + $0x38] sm:$0xff]  ;;  %142 = vmatpush.bf16.msra.mxu0 %v533_v0  ;;  %v540_v3 = vld [vmem:[#allocation7 + $0x30] sm:$0xff]  ;;  %v539_v4 = vld [vmem:[#allocation7 + $0x28] sm:$0xff]  ;;  %s410_s17 = sshll.u32 %s731_s16, 4  ;;  %s732_s20 = smov 128   ;;  %s411_s17 = int_to_ptr.vmem [resolvable:$true] %s410_s17 }
  0x18   :  { %220 = vmatpush.bf16.msra.mxu1 %v541_v1  ;;  %v538_v5 = vld [vmem:[#allocation7 + $0x20] sm:$0xff]  ;;  %v537_v6 = vld [vmem:[#allocation7 + $0x18] sm:$0xff]  ;;  %v536_v7 = vld [vmem:[#allocation7 + $0x10] sm:$0xff]  ;;  %s733_s21 = smov 8  }
  0x19   :  { %v535_v8 = vld [vmem:[#allocation7 + $0x8] sm:$0xff]  ;;  %v534_v9 = vld [vmem:[#allocation7] sm:$0xff]  ;;  %v549_v10 = vld [vmem:[#allocation8 + $0x38] sm:$0xff] }
  0x1a   :  { %435 = vmatmul.msk.bf16.vlgmr.msra.gmra.mxu0 %vm131_vm0, %v532_v2  ;;  %305 = vmatpush.bf16.msra.mxu2 %v549_v10  ;;  %v548_v11 = vld [vmem:[#allocation8 + $0x30] sm:$0xff]  ;;  %v547_v12 = vld [vmem:[#allocation8 + $0x28] sm:$0xff]  ;;  %v546_v13 = vld [vmem:[#allocation8 + $0x20] sm:$0xff] }
  0x1b   :  { %v568_v15 = vld [vmem:[%s816_s2] ss:$0 sm:$0xff]  ;;  %v545_v22 = vld [vmem:[#allocation8 + $0x18] sm:$0xff]  ;;  %v543_v24 = vld [vmem:[#allocation8 + $0x8] sm:$0xff] }
  0x1c   :  { %221 = vmatpush.bf16.msra.mxu1 %v540_v3  ;;  %v544_v23 = vld [vmem:[#allocation8 + $0x10] sm:$0xff]  ;;  %v542_v25 = vld [vmem:[#allocation8] sm:$0xff]  ;;  %v557_v26 = vld [vmem:[#allocation10 + $0x38] sm:$0xff] }
  0x1d   :  { %390 = vmatpush.bf16.msra.mxu3 %v557_v26  ;;  %v556_v27 = vld [vmem:[#allocation10 + $0x30] sm:$0xff]  ;;  %v555_v28 = vld [vmem:[#allocation10 + $0x28] sm:$0xff]  ;;  %v554_v29 = vld [vmem:[#allocation10 + $0x20] sm:$0xff] }
  0x1e   :  { %306 = vmatpush.bf16.msra.mxu2 %v548_v11  ;;  %v569_v31 = vld [vmem:[%s818_s4] ss:$0 sm:$0xff]  ;;  %v553_v38 = vld [vmem:[#allocation10 + $0x18] sm:$0xff]  ;;  %v551_v40 = vld [vmem:[#allocation10 + $0x8] sm:$0xff] }
  0x1f   :  { %v552_v39 = vld [vmem:[#allocation10 + $0x10] sm:$0xff]  ;;  %v550_v41 = vld [vmem:[#allocation10] sm:$0xff] }
  0x20   :  { %222 = vmatpush.bf16.msra.mxu1 %v539_v4  ;;  %v570_v43 = vld [vmem:[%s820_s6] ss:$0 sm:$0xff]  ;;  %s412_s6 = sshll.u32 %s823_s9, 4  ;;  %s413_s6 = int_to_ptr.hbm [resolvable:$true] %s412_s6 }
  0x21   :  { %391 = vmatpush.bf16.msra.mxu3 %v556_v27  ;;  %v571_v50 = vld [vmem:[%s822_s8] ss:$0 sm:$0xff] }
  0x22   :  { %307 = vmatpush.bf16.msra.mxu2 %v547_v12 }
  0x24   :  { %223 = vmatpush.bf16.msra.mxu1 %v538_v5 }
  0x25   :  { %392 = vmatpush.bf16.msra.mxu3 %v555_v28 }
  0x26   :  { %308 = vmatpush.bf16.msra.mxu2 %v546_v13 }
  0x28   :  { %224 = vmatpush.bf16.msra.mxu1 %v537_v6 }
  0x29   :  { %393 = vmatpush.bf16.msra.mxu3 %v554_v29 }
  0x2a   :  { %309 = vmatpush.bf16.msra.mxu2 %v545_v22 }
  0x2c   :  { %225 = vmatpush.bf16.msra.mxu1 %v536_v7 }
  0x2d   :  { %394 = vmatpush.bf16.msra.mxu3 %v553_v38 }
  0x2e   :  { %310 = vmatpush.bf16.msra.mxu2 %v544_v23 }
  0x30   :  { %226 = vmatpush.bf16.msra.mxu1 %v535_v8 }
  0x31   :  { %395 = vmatpush.bf16.msra.mxu3 %v552_v39 }
  0x32   :  { %311 = vmatpush.bf16.msra.mxu2 %v543_v24 }
  0x34   :  { %227 = vmatpush.bf16.msra.mxu1 %v534_v9 }
  0x35   :  { %396 = vmatpush.bf16.msra.mxu3 %v551_v40 }
  0x36   :  { %312 = vmatpush.bf16.msra.mxu2 %v542_v25 }
  0x39   :  { %397 = vmatpush.bf16.msra.mxu3 %v550_v41 }
  0x97   :  { %v144_v14 = vpop.f32.mrf.mxu0 }
  0x98   :  { %v145_v16 = vadd.f32 %v568_v15, %v144_v14 }
  0x9a   :  { %v149_v19 = vmax.f32 %v145_v16, 0.0 }
  0x9f   :  { %v146_v17 = vpop.f32.mrf.mxu0 }
  0xa0   :  { %v147_v18 = vadd.f32 %v568_v15, %v146_v17 }
  0xa2   :  { %v150_v20 = vmax.f32 %v147_v18, 0.0 }
  0xa4   :  { %v151_v21 = vpack.c.bf16 %v150_v20, %v149_v19 }
  0xa6   :  { %228 = vmatmul.bf16.vlgmr.msra.gmra.mxu1 %v151_v21 }
 0x123   :  { %v229_v30 = vpop.f32.mrf.mxu1 }
 0x124   :  { %v230_v32 = vadd.f32 %v569_v31, %v229_v30 }
 0x126   :  { %v234_v35 = vmax.f32 %v230_v32, 0.0 }
 0x12b   :  { %v231_v33 = vpop.f32.mrf.mxu1 }
 0x12c   :  { %v232_v34 = vadd.f32 %v569_v31, %v231_v33 }
 0x12e   :  { %v235_v36 = vmax.f32 %v232_v34, 0.0 }
 0x130   :  { %v236_v37 = vpack.c.bf16 %v235_v36, %v234_v35 }
 0x132   :  { %313 = vmatmul.bf16.vlgmr.msra.gmra.mxu2 %v236_v37 }
 0x1b5   :  { %v314_v42 = vpop.f32.mrf.mxu2 }
 0x1b6   :  { %v315_v44 = vadd.f32 %v570_v43, %v314_v42 }
 0x1b8   :  { %v319_v47 = vmax.f32 %v315_v44, 0.0 }
 0x1bd   :  { %v316_v45 = vpop.f32.mrf.mxu2 }
 0x1be   :  { %v317_v46 = vadd.f32 %v570_v43, %v316_v45 }
 0x1c0   :  { %v320_v48 = vmax.f32 %v317_v46, 0.0 }
 0x1c2   :  { %v321_v49 = vpack.c.bf16 %v320_v48, %v319_v47 }
 0x1c4   :  { %398 = vmatmul.bf16.vlgmr.msra.gmra.mxu3 %v321_v49 }
 0x247   :  { %v399_v51 = vpop.f32.mrf.mxu3 }
 0x248   :  { %v400_v52 = vadd.f32 %v571_v50, %v399_v51 }
 0x24a   :  { %404 = vst [vmem:[#allocation11] sm:$0xff] %v400_v52 }
 0x24f   :  { %v401_v53 = vpop.f32.mrf.mxu3 }
 0x250   :  { %v402_v54 = vadd.f32 %v571_v50, %v401_v53 }
 0x252   :  { %405 = vst [vmem:[#allocation11 + $0x8] sm:$0xff] %v402_v54 }
 0x253   :  { %418 = dma.vmem_to_hbm [thread:$0]  %s411_s17, 256, %s413_s6, [#allocation4], %s732_s20, %s732_s20, %s733_s21  }
 0x254   :  { %722 = dma.done.wait [#allocation4], 256  }
 0x255   :  { %723 = vsyncadd [#allocation4], 4294967040 }
 0x256   :  { %423 = vsyncpa [#allocation3], 1 }
 0x257   :  { %424 = vsyncpa [#allocation6], 1 }
 0x258   :  { %425 = vsyncpa [#allocation9], 1 }
 0x259   :  { %426 = vsyncpa [#allocation4], 1 }

</bundles_post_ra>
